<compile_context>
chip_gen: v7x
topology: tpu7x:2x2x1
jax: 0.10.0
libtpu: 0.0.40
codegen_flags: <defaults>
</compile_context>

<pallas_src>
import functools

import jax
import jax.numpy as jnp
from jax import lax
from jax.experimental import pallas as pl
from jax.experimental.pallas import tpu as pltpu


# ---------------------------------------------------------------------------
# Tiled linear kernel: y = x @ W^T + b   (W kept in torch (Cout, Cin) layout)
# ---------------------------------------------------------------------------
def _linear_kernel(x_ref, w_ref, b_ref, o_ref, acc_ref):
    """One (tm, tn) output tile; accumulates over the Cin (k) grid axis."""
    k = pl.program_id(2)

    @pl.when(k == 0)
    def _():
        acc_ref[...] = jnp.zeros_like(acc_ref)

    # y += x_blk @ w_blk^T : contract over Cin of both operands (no transpose).
    acc_ref[...] += lax.dot_general(
        x_ref[...].astype(jnp.bfloat16),
        w_ref[...].astype(jnp.bfloat16),
        dimension_numbers=(((1,), (1,)), ((), ())),
        preferred_element_type=jnp.float32,
    )

    @pl.when(k == pl.num_programs(2) - 1)
    def _():
        o_ref[...] = (acc_ref[...] + b_ref[...].astype(jnp.float32)).astype(o_ref.dtype)


def _pick_tile(dim, target, unit):
    """Largest multiple of `unit` <= target that divides dim, else the full dim."""
    if dim <= target:
        return dim
    t = (target // unit) * unit
    while t >= unit:
        if dim % t == 0:
            return t
        t -= unit
    return dim


def linear(x2d, w, b, *, tm_target=256, tn_target=256, tk_target=512):
    """y = x2d @ w^T + b.  x2d: (M, Cin); w: (Cout, Cin); b: (Cout,)."""
    M, Cin = x2d.shape
    Cout = w.shape[0]
    tm = _pick_tile(M, tm_target, 8)        # sublane axis of x / out blocks
    tn = _pick_tile(Cout, tn_target, 128)   # lane axis of out, sublane of w
    tk = _pick_tile(Cin, tk_target, 128)    # lane axis of x and w blocks
    grid = (M // tm, Cout // tn, Cin // tk)
    return pl.pallas_call(
        _linear_kernel,
        out_shape=jax.ShapeDtypeStruct((M, Cout), x2d.dtype),
        grid=grid,
        in_specs=[
            pl.BlockSpec((tm, tk), lambda i, j, k: (i, k)),
            pl.BlockSpec((tn, tk), lambda i, j, k: (j, k)),
            pl.BlockSpec((1, tn), lambda i, j, k: (0, j)),
        ],
        out_specs=pl.BlockSpec((tm, tn), lambda i, j, k: (i, j)),
        scratch_shapes=[pltpu.VMEM((tm, tn), jnp.float32)],
        compiler_params=pltpu.CompilerParams(
            dimension_semantics=("parallel", "parallel", "arbitrary"),
            vmem_limit_bytes=32 * 1024 * 1024,
        ),
    )(x2d, w, b.reshape(1, Cout))


# ---------------------------------------------------------------------------
# Attention core kernel: one batch element per grid step, all heads fused.
# Blocks: qkv (1, N, 3C), policy (1, 1, N), out (1, N, C) lane-dense.
# ---------------------------------------------------------------------------
def _attn_kernel(qkv_ref, pol_ref, o_ref, *, num_heads, scale, eps):
    N = o_ref.shape[1]
    C = o_ref.shape[2]
    D = C // num_heads

    x2 = qkv_ref[...].reshape(N, 3 * C)                     # columns = [q | k | v] x heads
    pol = pol_ref[...].reshape(1, N).astype(jnp.float32)    # policy along the key axis

    # attn_policy[i, j] = 1 if i == j else policy[j]  (shared across heads; hoisted)
    row = lax.broadcasted_iota(jnp.int32, (N, N), 0)
    col = lax.broadcasted_iota(jnp.int32, (N, N), 1)
    attn_policy = jnp.where(row == col, 1.0, pol)            # (N, N), f32

    head_outs = []
    for h in range(num_heads):                               # static unroll over heads
        q = (x2[:, h * D:(h + 1) * D] * scale).astype(jnp.bfloat16)   # scale folded into q
        k = x2[:, C + h * D:C + (h + 1) * D].astype(jnp.bfloat16)
        v = x2[:, 2 * C + h * D:2 * C + (h + 1) * D].astype(jnp.bfloat16)

        # s = q @ k^T : contract over D of both operands (no materialized k.T)
        s = lax.dot_general(q, k, dimension_numbers=(((1,), (1,)), ((), ())),
                            preferred_element_type=jnp.float32)        # (N, N)

        # softmax_with_policy (f32): exp-then-mask, eps/N numerator, eps denominator
        m = jnp.max(s, axis=-1, keepdims=True)
        e = jnp.exp(s - m) * attn_policy
        denom_inv = pl.reciprocal(jnp.sum(e, axis=-1, keepdims=True) + eps, approx=True)
        attn_n = (e + eps / N) * denom_inv                              # (N, N)

        head_outs.append(jnp.dot(attn_n.astype(jnp.bfloat16), v,
                                 preferred_element_type=jnp.float32))   # (N, D)

    out = jnp.concatenate(head_outs, axis=-1)                 # (N, C), heads on lanes
    o_ref[...] = out.reshape(1, N, C).astype(o_ref.dtype)


def attention_forward(x, policy, params, num_heads):
    B, N, C = x.shape
    D = C // num_heads
    scale = D ** (-0.5)

    # qkv projection; keep (B, N, 3C) layout -> no HBM transpose into (3,B,H,N,D).
    qkv = linear(x.reshape(B * N, C), params["qkv_w"], params["qkv_b"])
    qkv = qkv.reshape(B, N, 3 * C)            # free (contiguous)
    pol = policy.reshape(B, 1, N)             # lane-dense policy, free (contiguous)

    # NOTE: for long sequences, add a kv grid axis ("arbitrary") with flash-style
    # online softmax so the (N, N) scores never exceed one block (v7x 64 MiB VMEM).
    attn_out = pl.pallas_call(
        functools.partial(_attn_kernel, num_heads=num_heads, scale=scale, eps=1e-6),
        out_shape=jax.ShapeDtypeStruct((B, N, C), x.dtype),
        grid=(B,),
        in_specs=[
            pl.BlockSpec((1, N, 3 * C), lambda b: (b, 0, 0)),
            pl.BlockSpec((1, 1, N), lambda b: (b, 0, 0)),
        ],
        out_specs=pl.BlockSpec((1, N, C), lambda b: (b, 0, 0)),
        compiler_params=pltpu.CompilerParams(
            dimension_semantics=("parallel",),
            vmem_limit_bytes=32 * 1024 * 1024,
        ),
    )(qkv, pol)                               # (B, N, C) — heads already concatenated

    out = linear(attn_out.reshape(B * N, C), params["proj_w"], params["proj_b"])
    # attn_drop / proj_drop are p=0.0 -> identity (eval semantics).
    return out.reshape(B, N, C)


# ---------------------------------------------------------------------------
# Pure-JAX reference (mirrors the PyTorch forward) for a correctness check
# ---------------------------------------------------------------------------
def reference_forward(x, policy, params, num_heads, eps=1e-6):
    B, N, C = x.shape
    D = C // num_heads
    scale = D ** (-0.5)
    qkv = x.reshape(B * N, C) @ params["qkv_w"].T + params["qkv_b"]
    qkv = qkv.reshape(B, N, 3, num_heads, D).transpose(2, 0, 3, 1, 4)
    q, k, v = qkv[0], qkv[1], qkv[2]
    attn = jnp.einsum("bhnd,bhmd->bhnm", q, k) * scale
    pol = policy.reshape(B, 1, 1, N)
    eye = jnp.eye(N, dtype=pol.dtype)[None, None]
    ap = pol + (1.0 - pol) * eye
    m = attn.max(-1, keepdims=True)
    e = jnp.exp(attn - m) * ap
    attn = (e + eps / N) / (e.sum(-1, keepdims=True) + eps)
    out = jnp.einsum("bhnm,bhmd->bhnd", attn, v).transpose(0, 2, 1, 3).reshape(B, N, C)
    return out @ params["proj_w"].T + params["proj_b"]


if __name__ == "__main__":
    B, N, C, H = 2, 8, 32, 8

    key = jax.random.PRNGKey(0)
    kx, kp, k1, k2, k3 = jax.random.split(key, 5)

    x = jax.random.normal(kx, (B, N, C), dtype=jnp.float32)
    policy = jax.random.bernoulli(kp, 0.7, (B, N, 1)).astype(jnp.float32)

    params = {
        # qkv_bias=False in the module default -> zero bias
        "qkv_w": 0.02 * jax.random.normal(k1, (3 * C, C), dtype=jnp.float32),
        "qkv_b": jnp.zeros((3 * C,), dtype=jnp.float32),
        "proj_w": 0.02 * jax.random.normal(k2, (C, C), dtype=jnp.float32),
        "proj_b": 0.01 * jax.random.normal(k3, (C,), dtype=jnp.float32),
    }

    out = attention_forward(x, policy, params, H)
    out = jax.block_until_ready(out)

    ref = reference_forward(x, policy, params, H)
    assert out.shape == (B, N, C)
    # MXU operands run in bf16 (softmax math stays f32) -> bf16-level tolerance.
    assert jnp.allclose(out, ref, atol=2e-2, rtol=2e-2), "mismatch vs reference"

    print("KERNEL_OK")
</pallas_src>

<mosaic_0001>
module attributes {stable_mosaic.version = 11 : i64} {
  func.func @_linear_kernel(%arg0: i32, %arg1: i32, %arg2: i32, %arg3: memref<16x32xf32, #tpu.memory_space<vmem>>, %arg4: memref<96x32xf32, #tpu.memory_space<vmem>>, %arg5: memref<1x96xf32, #tpu.memory_space<vmem>>, %arg6: memref<16x96xf32, #tpu.memory_space<vmem>>, %arg7: memref<16x96xf32, #tpu.memory_space<vmem>>) attributes {dimension_semantics = [#tpu.dimension_semantics<parallel>, #tpu.dimension_semantics<parallel>, #tpu.dimension_semantics<arbitrary>], iteration_bounds = array<i64: 1, 1, 1>, scalar_prefetch = 0 : i64, scratch_operands = 1 : i64, tpu.core_type = #tpu.core_type<tc>, window_params = [{transform_indices = @transform_0, window_bounds = array<i64: 16, 32>}, {transform_indices = @transform_1, window_bounds = array<i64: 96, 32>}, {transform_indices = @transform_2, window_bounds = array<i64: 1, 96>}, {transform_indices = @transform_3, window_bounds = array<i64: 16, 96>}]} {
    %c0_i32 = arith.constant 0 : i32
    %0 = arith.cmpi eq, %arg2, %c0_i32 : i32
    %1 = arith.extui %0 : i1 to i32
    %c0_i32_0 = arith.constant 0 : i32
    %2 = arith.cmpi ne, %1, %c0_i32_0 : i32
    scf.if %2 {
      %cst_10 = arith.constant 0.000000e+00 : f32
      %14 = vector.broadcast %cst_10 : f32 to vector<16x96xf32>
      %c0_11 = arith.constant 0 : index
      %c0_12 = arith.constant 0 : index
      %15 = vector.load %arg7[%c0_11, %c0_12] : memref<16x96xf32, #tpu.memory_space<vmem>>, vector<16x96xf32>
      tpu.vector_store %arg7[%c0_11, %c0_12], %14 {strides = array<i32>} : memref<16x96xf32, #tpu.memory_space<vmem>>, vector<16x96xf32>,
    } else {
    }
    %c0 = arith.constant 0 : index
    %c0_1 = arith.constant 0 : index
    %3 = vector.load %arg7[%c0, %c0_1] : memref<16x96xf32, #tpu.memory_space<vmem>>, vector<16x96xf32>
    %c0_2 = arith.constant 0 : index
    %c0_3 = arith.constant 0 : index
    %4 = vector.load %arg3[%c0_2, %c0_3] : memref<16x32xf32, #tpu.memory_space<vmem>>, vector<16x32xf32>
    %5 = arith.truncf %4 : vector<16x32xf32> to vector<16x32xbf16>
    %c0_4 = arith.constant 0 : index
    %c0_5 = arith.constant 0 : index
    %6 = vector.load %arg4[%c0_4, %c0_5] : memref<96x32xf32, #tpu.memory_space<vmem>>, vector<96x32xf32>
    %7 = arith.truncf %6 : vector<96x32xf32> to vector<96x32xbf16>
    %cst = arith.constant dense<0.000000e+00> : vector<16x96xf32>
    %8 = tpu.matmul %5, %7, %cst {dimension_numbers = #tpu.dot_dimension_numbers<[1], [1], [0], [0], [0, 0, 1, 0], [], []>} : vector<16x32xbf16>, vector<96x32xbf16>, vector<16x96xf32> -> vector<16x96xf32>
    %9 = arith.addf %3, %8 : vector<16x96xf32>
    %c0_6 = arith.constant 0 : index
    %c0_7 = arith.constant 0 : index
    %10 = vector.load %arg7[%c0_6, %c0_7] : memref<16x96xf32, #tpu.memory_space<vmem>>, vector<16x96xf32>
    tpu.vector_store %arg7[%c0_6, %c0_7], %9 {strides = array<i32>} : memref<16x96xf32, #tpu.memory_space<vmem>>, vector<16x96xf32>,
    %c0_i32_8 = arith.constant 0 : i32
    %11 = arith.cmpi eq, %arg2, %c0_i32_8 : i32
    %12 = arith.extui %11 : i1 to i32
    %c0_i32_9 = arith.constant 0 : i32
    %13 = arith.cmpi ne, %12, %c0_i32_9 : i32
    scf.if %13 {
      %c0_10 = arith.constant 0 : index
      %c0_11 = arith.constant 0 : index
      %14 = vector.load %arg7[%c0_10, %c0_11] : memref<16x96xf32, #tpu.memory_space<vmem>>, vector<16x96xf32>
      %c0_12 = arith.constant 0 : index
      %c0_13 = arith.constant 0 : index
      %15 = vector.load %arg5[%c0_12, %c0_13] : memref<1x96xf32, #tpu.memory_space<vmem>>, vector<1x96xf32>
      %16 = vector.broadcast %15 : vector<1x96xf32> to vector<16x96xf32>
      %17 = arith.addf %14, %16 : vector<16x96xf32>
      %c0_14 = arith.constant 0 : index
      %c0_15 = arith.constant 0 : index
      %18 = vector.load %arg6[%c0_14, %c0_15] : memref<16x96xf32, #tpu.memory_space<vmem>>, vector<16x96xf32>
      tpu.vector_store %arg6[%c0_14, %c0_15], %17 {strides = array<i32>} : memref<16x96xf32, #tpu.memory_space<vmem>>, vector<16x96xf32>,
    } else {
    }
    return
  }
  func.func @transform_0(%arg0: i32, %arg1: i32, %arg2: i32) -> (i32, i32) {
    %c0_i32 = arith.constant 0 : i32
    return %arg0, %arg2 : i32, i32
  }
  func.func @transform_1(%arg0: i32, %arg1: i32, %arg2: i32) -> (i32, i32) {
    %c0_i32 = arith.constant 0 : i32
    return %arg1, %arg2 : i32, i32
  }
  func.func @transform_2(%arg0: i32, %arg1: i32, %arg2: i32) -> (i32, i32) {
    %c0_i32 = arith.constant 0 : i32
    %c0_i32_0 = arith.constant 0 : i32
    return %c0_i32, %arg1 : i32, i32
  }
  func.func @transform_3(%arg0: i32, %arg1: i32, %arg2: i32) -> (i32, i32) {
    %c0_i32 = arith.constant 0 : i32
    return %arg0, %arg1 : i32, i32
  }
}

</mosaic_0001>

<bundles_post_ra>
// kernel: tpu_custom_call.1
= control target key start
LH: loop header
LB: loop body
LE: loop exit
PB: predicated region body
PF: predicated region fallthrough
CT: control target
= control target key end

     0   :  { %vm46_vm0 = vcmask 261120   ;;  %v200_v2 = vmov 0.0   ;;  %vm201_vm1 = vmmov 0   ;;  %vm20_vm2 = vcmask 785408   ;;  %s295_s0 = inlined_call_operand.vmem [shape: f32[16,32], index: 0, kind: input, shape index: {}]   ;;  %s296_s1 = inlined_call_operand.vmem [shape: f32[96,32], index: 1, kind: input, shape index: {}]   ;;  %s297_s2 = inlined_call_operand.vmem [shape: f32[1,96], index: 2, kind: input, shape index: {}]   ;;  %s298_s3 = inlined_call_operand.hbm [shape: f32[16,96], index: 3, kind: output, shape index: {}]  }
   0x1   :  { %v28_v0 = vld [vmem:[%s296_s1] sm:$0xff]  ;;  %v29_v1 = vld [vmem:[%s296_s1 + $0x8] sm:$0xff]  ;;  %155 = vmatprep.subr.bf16.mxu0 %v200_v2  ;;  %167 = vmatprep.mubr.msk.bf16.mxu0 %vm201_vm1, %v200_v2  ;;  %v30_v4 = vld [vmem:[%s296_s1 + $0x10] sm:$0xff]  ;;  %21 = vst.msk [vmem:[#allocation2] sm:$0xff] %vm20_vm2, %v200_v2 }
   0x2   :  { %v40_v3 = vpack.c.bf16 %v29_v1, %v28_v0  ;;  %v31_v5 = vld [vmem:[%s296_s1 + $0x18] sm:$0xff]  ;;  %22 = vst.msk [vmem:[#allocation2 + $0x8] sm:$0xff] %vm20_vm2, %v200_v2 }
   0x4   :  { %v51_v6 = vsel %vm46_vm0, %v40_v3, 0 }
   0x5   :  { %156 = vmatpush3.bf16.xpose.msra.mxu0 %v51_v6 }
   0x6   :  { %8 = vsyncpa [#allocation4], 0  ;;  %157 = vmatprep.subr.bf16.mxu0 %v200_v2  ;;  %v41_v7 = vpack.c.bf16 %v31_v5, %v30_v4  ;;  %v32_v9 = vld [vmem:[%s296_s1 + $0x20] sm:$0xff]  ;;  %v33_v10 = vld [vmem:[%s296_s1 + $0x28] sm:$0xff] }
   0x7   :  { %v42_v11 = vpack.c.bf16 %v33_v10, %v32_v9  ;;  %v34_v13 = vld [vmem:[%s296_s1 + $0x30] sm:$0xff]  ;;  %v35_v14 = vld [vmem:[%s296_s1 + $0x38] sm:$0xff]  ;;  %v36_v17 = vld [vmem:[%s296_s1 + $0x40] sm:$0xff] }
   0x8   :  { %v54_v8 = vsel %vm46_vm0, %v41_v7, 0  ;;  %v43_v15 = vpack.c.bf16 %v35_v14, %v34_v13  ;;  %v37_v18 = vld [vmem:[%s296_s1 + $0x48] sm:$0xff]  ;;  %v38_v21 = vld [vmem:[%s296_s1 + $0x50] sm:$0xff]  ;;  %v39_v22 = vld [vmem:[%s296_s1 + $0x58] sm:$0xff] }
   0x9   :  { %v57_v12 = vsel %vm46_vm0, %v42_v11, 0  ;;  %v44_v19 = vpack.c.bf16 %v37_v18, %v36_v17  ;;  %v45_v23 = vpack.c.bf16 %v39_v22, %v38_v21  ;;  %v25_v25 = vld [vmem:[%s295_s0] sm:$0xff]  ;;  %v26_v26 = vld [vmem:[%s295_s0 + $0x8] sm:$0xff]  ;;  %s202_s0 = smov [#allocation3]  }
   0xa   :  { %v60_v16 = vsel %vm46_vm0, %v43_v15, 0  ;;  %v27_v27 = vpack.c.bf16 %v26_v26, %v25_v25  ;;  %v23_v28 = vld [vmem:[#allocation2] sm:$0xff]  ;;  %v24_v30 = vld [vmem:[#allocation2 + $0x8] sm:$0xff]  ;;  %s135_s14 = sshll.u32 %s202_s0, 4  ;;  %s136_s14 = int_to_ptr.vmem [resolvable:$true] %s135_s14 }
   0xb   :  { %v63_v20 = vsel %vm46_vm0, %v44_v19, 0  ;;  %v66_v24 = vsel %vm46_vm0, %v45_v23, 0  ;;  %v147_v36 = vld [vmem:[%s297_s2] ss:$0 sm:$0xff]  ;;  %s176_s15 = scalar_lea.vmem %s136_s14, 256  ;;  %p181_p1 = scmp.lt.s32.totalorder %s136_s14, %s136_s14 }
   0xc   :  { %p177_p0 = scmp.ne.s32.totalorder %s136_s14, %s176_s15  ;;  %p182_p2 = scmp.lt.s32.totalorder %s176_s15, %s176_s15 }
   0xd   :  { %158 = vmatpush3.bf16.xpose.msra.mxu0 %v54_v8 }
   0xe   :  { %159 = vmatprep.subr.bf16.mxu0 %v200_v2  ;;  %p183_p3 = por %p182_p2, %p181_p1 }
  0x10   :  { %p184_p4 = pnand %p183_p3, %p177_p0 }
  0x15   :  { %160 = vmatpush3.bf16.xpose.msra.mxu0 %v57_v12 }
  0x16   :  { %161 = vmatprep.subr.bf16.mxu0 %v200_v2 }
  0x1d   :  { %162 = vmatpush3.bf16.xpose.msra.mxu0 %v60_v16 }
  0x1e   :  { %163 = vmatprep.subr.bf16.mxu0 %v200_v2 }
  0x25   :  { %164 = vmatpush3.bf16.xpose.msra.mxu0 %v63_v20 }
  0x26   :  { %165 = vmatprep.subr.bf16.mxu0 %v200_v2 }
  0x2d   :  { %166 = vmatpush3.bf16.xpose.msra.mxu0 %v66_v24 }
  0x34   :  { %168 = vmatmul.mubr.msk.bf16.vlgmr.msra.gmra.mrb[0].mxu0 %vm46_vm0, %v27_v27 }
 0x107   :  { %v102_v29 = vpop.f32.mrb[0].mxu0 }
 0x108   :  { %v109_v31 = vadd.f32 %v102_v29, %v23_v28  ;;  %v169_v32 = vpop.f32.mrb[1].mxu0 }
 0x109   :  { %v105_v33 = vpop.f32.mrb[2].mxu0 }
 0x10a   :  { %112 = vst.msk [vmem:[#allocation2] sm:$0xff] %vm20_vm2, %v109_v31  ;;  %v110_v34 = vadd.f32 %v105_v33, %v24_v30  ;;  %v170_v35 = vpop.f32.mrb[3].mxu0 }
 0x10c   :  { %113 = vst.msk [vmem:[#allocation2 + $0x8] sm:$0xff] %vm20_vm2, %v110_v34 }
 0x111   :  { %v117_v37 = vld [vmem:[#allocation2] sm:$0xff] }
 0x112   :  { %v126_v38 = vadd.f32 %v147_v36, %v117_v37 }
 0x113   :  { %v118_v39 = vld [vmem:[#allocation2 + $0x8] sm:$0xff] }
 0x114   :  { %v127_v40 = vadd.f32 %v147_v36, %v118_v39  ;;  %128 = vst.msk [vmem:[#allocation3] sm:$0xff] %vm20_vm2, %v126_v38 }
 0x116   :  { %129 = vst.msk [vmem:[#allocation3 + $0x8] sm:$0xff] %vm20_vm2, %v127_v40 }
 0x117   :  { %187 = shalt.err (!%p184_p4)
}
 0x118   :  { %s188_s17 = scalar_lea.hbm %s298_s3, 256 }
 0x119   :  { %p189_p5 = scmp.ne.s32.totalorder %s298_s3, %s188_s17  ;;  %p192_p6 = scmp.lt.u32.totalorder %s188_s17, %s298_s3 }
 0x11b   :  { %p194_p7 = pnand %p192_p6, %p189_p5 }
 0x11d   :  { %197 = shalt.err (!%p194_p7)
}
 0x11e   :  { %s203_s22 = smov 128   ;;  %s204_s23 = smov 8  }
 0x11f   :  { %141 = dma.vmem_to_hbm [thread:$0]  %s136_s14, 256, %s298_s3, [#allocation4], %s203_s22, %s203_s22, %s204_s23  }
 0x120   :  { %198 = dma.done.wait [#allocation4], 256  }
 0x121   :  { %199 = vsyncadd [#allocation4], 4294967040 }
 0x122   :  { %145 = vsyncpa [#allocation4], 1 }

</bundles_post_ra>
